<compile_context>
chip_gen: v6e
topology: v6e:2x2x1
jax: 0.10.0
libtpu: 0.0.40
codegen_flags: <defaults>
</compile_context>

<pallas_src>
import math
import functools

import jax
import jax.numpy as jnp
from jax.experimental import pallas as pl
from jax.experimental.pallas import tpu as pltpu

_GELU_C = math.sqrt(2.0 / math.pi)
_VMEM_BUDGET = 48 * 1024 * 1024          # conservative: fits v7x's 64 MiB VMEM
_VMEM_LIMIT_BYTES = 56 * 1024 * 1024     # above 16/32 MiB scoped defaults


def _new_gelu(x):
    # identical to the PyTorch new_gelu (tanh approximation)
    return 0.5 * x * (1.0 + jnp.tanh(_GELU_C * (x + 0.044715 * (x * x * x))))


def _mlp_kernel(x_ref, w1_ref, b1_ref, w2_ref, b2_ref, o_ref, acc_ref):
    # x_ref : (TM, E)    w1_ref : (E, TH)   b1_ref : (1, TH)
    # w2_ref: (TH, E)    b2_ref : (1, E)    o_ref  : (TM, E)
    # acc_ref: (TM, E) f32 scratch, resident across the H (k) axis.
    k = pl.program_id(1)

    @pl.when(k == 0)
    def _init():
        acc_ref[...] = jnp.zeros_like(acc_ref)

    # first projection chunk: (TM, E) @ (E, TH) on the MXU, f32 accumulate
    h = jnp.dot(x_ref[...], w1_ref[...], preferred_element_type=jnp.float32)
    h = h + b1_ref[...]                       # b1 per H-chunk, before gelu

    # new_gelu in f32 on VPU/EUP (tanh -> EUP slot, free under the MXU)
    g = _new_gelu(h)

    # second projection chunk: (TM, TH) @ (TH, E), accumulate into f32 scratch
    acc_ref[...] += jnp.dot(g.astype(w2_ref.dtype), w2_ref[...],
                            preferred_element_type=jnp.float32)

    @pl.when(k == pl.num_programs(1) - 1)
    def _finalize():
        # b2 added exactly once, in the epilogue
        o_ref[...] = (acc_ref[...] + b2_ref[...]).astype(o_ref.dtype)


def _round_up(x, m):
    return ((x + m - 1) // m) * m


def _pick_tiles(m_pad, h_pad, e_pad, in_bytes):
    """Pick (TM, TH) that fit the VMEM budget (double-buffered inputs/outputs
    + f32 accumulator)."""
    tm = min(256, m_pad)
    th = min(512, h_pad)

    def est(tm_, th_):
        ins = 2 * (tm_ * e_pad + e_pad * th_ + th_ + th_ * e_pad + e_pad) * in_bytes
        outs = 2 * tm_ * e_pad * in_bytes
        acc = tm_ * e_pad * 4
        return ins + outs + acc

    while est(tm, th) > _VMEM_BUDGET and th > 128:
        th = max(128, (th // 2) // 128 * 128)
    while est(tm, th) > _VMEM_BUDGET and tm > 8:
        tm = max(8, (tm // 2) // 8 * 8)
    return tm, th


@jax.jit
def mlp_forward(x, w1, b1, w2, b2):
    """x: (B, S, E); w1: (E, H); b1: (H,); w2: (H, E); b2: (E,).

    w1/w2 are stored as (in_features, out_features), i.e. the transpose of
    PyTorch nn.Linear's weight, so the kernel computes x @ W + b directly.
    """
    B, S, E = x.shape
    H = w1.shape[1]
    M = B * S
    dt = x.dtype
    in_bytes = jnp.dtype(dt).itemsize

    # --- pad to lane/sublane friendly sizes (zero padding is a no-op) ------
    e_pad = _round_up(E, 128)
    h_pad = _round_up(H, 128)
    m_pad = _round_up(M, 8)

    tm, th = _pick_tiles(m_pad, h_pad, e_pad, in_bytes)
    m_pad = _round_up(m_pad, tm)
    h_pad = _round_up(h_pad, th)

    x2d = jnp.pad(x.reshape(M, E), ((0, m_pad - M), (0, e_pad - E)))
    w1p = jnp.pad(w1, ((0, e_pad - E), (0, h_pad - H)))
    b1p = jnp.pad(b1, (0, h_pad - H)).reshape(1, h_pad)
    w2p = jnp.pad(w2, ((0, h_pad - H), (0, e_pad - E)))
    b2p = jnp.pad(b2, (0, e_pad - E)).reshape(1, e_pad)

    grid = (m_pad // tm, h_pad // th)

    out2d = pl.pallas_call(
        _mlp_kernel,
        out_shape=jax.ShapeDtypeStruct((m_pad, e_pad), dt),
        grid_spec=pltpu.PrefetchScalarGridSpec(
            num_scalar_prefetch=0,
            grid=grid,
            in_specs=[
                pl.BlockSpec((tm, e_pad), lambda i, k: (i, 0)),   # x tile
                pl.BlockSpec((e_pad, th), lambda i, k: (0, k)),   # w1 chunk
                pl.BlockSpec((1, th),     lambda i, k: (0, k)),   # b1 chunk
                pl.BlockSpec((th, e_pad), lambda i, k: (k, 0)),   # w2 chunk
                pl.BlockSpec((1, e_pad),  lambda i, k: (0, 0)),   # b2
            ],
            out_specs=pl.BlockSpec((tm, e_pad), lambda i, k: (i, 0)),
            scratch_shapes=[pltpu.VMEM((tm, e_pad), jnp.float32)],
        ),
        compiler_params=pltpu.CompilerParams(
            dimension_semantics=("parallel", "arbitrary"),
            vmem_limit_bytes=_VMEM_LIMIT_BYTES,
        ),
    )(x2d, w1p, b1p, w2p, b2p)

    return out2d[:M, :E].reshape(B, S, E)


def _reference(x, w1, b1, w2, b2):
    h = jnp.einsum("bse,eh->bsh", x, w1) + b1
    g = _new_gelu(h)
    return jnp.einsum("bsh,he->bse", g, w2) + b2


if __name__ == "__main__":
    # module config: embedding_dimension=32, bias=True, dropout_rate=0.0
    B, S, E = 2, 8, 32
    H = 4 * E

    key = jax.random.PRNGKey(0)
    kx, kw1, kb1, kw2, kb2 = jax.random.split(key, 5)

    x = jax.random.normal(kx, (B, S, E), dtype=jnp.float32)

    # deterministic param init (uniform +-1/sqrt(fan_in), like nn.Linear)
    lim1 = 1.0 / math.sqrt(E)
    lim2 = 1.0 / math.sqrt(H)
    w1 = jax.random.uniform(kw1, (E, H), jnp.float32, -lim1, lim1)
    b1 = jax.random.uniform(kb1, (H,), jnp.float32, -lim1, lim1)
    w2 = jax.random.uniform(kw2, (H, E), jnp.float32, -lim2, lim2)
    b2 = jax.random.uniform(kb2, (E,), jnp.float32, -lim2, lim2)

    out = mlp_forward(x, w1, b1, w2, b2)
    out = jax.block_until_ready(out)

    ref = _reference(x, w1, b1, w2, b2)
    assert out.shape == (B, S, E)
    assert jnp.allclose(out, ref, atol=1e-5, rtol=1e-5), "mismatch vs reference"

    print("KERNEL_OK")
</pallas_src>

<mosaic_0001>
module attributes {stable_mosaic.version = 11 : i64} {
  func.func @_mlp_kernel(%arg0: i32, %arg1: i32, %arg2: memref<16x128xf32, #tpu.memory_space<vmem>>, %arg3: memref<128x128xf32, #tpu.memory_space<vmem>>, %arg4: memref<1x128xf32, #tpu.memory_space<vmem>>, %arg5: memref<128x128xf32, #tpu.memory_space<vmem>>, %arg6: memref<1x128xf32, #tpu.memory_space<vmem>>, %arg7: memref<16x128xf32, #tpu.memory_space<vmem>>, %arg8: memref<16x128xf32, #tpu.memory_space<vmem>>) attributes {dimension_semantics = [#tpu.dimension_semantics<parallel>, #tpu.dimension_semantics<arbitrary>], iteration_bounds = array<i64: 1, 1>, scalar_prefetch = 0 : i64, scratch_operands = 1 : i64, tpu.core_type = #tpu.core_type<tc>, window_params = [{transform_indices = @transform_0, window_bounds = array<i64: 16, 128>}, {transform_indices = @transform_1, window_bounds = array<i64: 128, 128>}, {transform_indices = @transform_2, window_bounds = array<i64: 1, 128>}, {transform_indices = @transform_3, window_bounds = array<i64: 128, 128>}, {pipeline_mode = #tpu.pipeline_mode<synchronous>, transform_indices = @transform_4, window_bounds = array<i64: 1, 128>}, {transform_indices = @transform_5, window_bounds = array<i64: 16, 128>}]} {
    %c0_i32 = arith.constant 0 : i32
    %0 = arith.cmpi eq, %arg1, %c0_i32 : i32
    %1 = arith.extui %0 : i1 to i32
    %c0_i32_0 = arith.constant 0 : i32
    %2 = arith.cmpi ne, %1, %c0_i32_0 : i32
    scf.if %2 {
      %cst_19 = arith.constant 0.000000e+00 : f32
      %30 = vector.broadcast %cst_19 : f32 to vector<16x128xf32>
      %c0_20 = arith.constant 0 : index
      %c0_21 = arith.constant 0 : index
      %31 = vector.load %arg8[%c0_20, %c0_21] : memref<16x128xf32, #tpu.memory_space<vmem>>, vector<16x128xf32>
      tpu.vector_store %arg8[%c0_20, %c0_21], %30 {strides = array<i32>} : memref<16x128xf32, #tpu.memory_space<vmem>>, vector<16x128xf32>,
    } else {
    }
    %c0 = arith.constant 0 : index
    %c0_1 = arith.constant 0 : index
    %3 = vector.load %arg2[%c0, %c0_1] : memref<16x128xf32, #tpu.memory_space<vmem>>, vector<16x128xf32>
    %c0_2 = arith.constant 0 : index
    %c0_3 = arith.constant 0 : index
    %4 = vector.load %arg3[%c0_2, %c0_3] : memref<128x128xf32, #tpu.memory_space<vmem>>, vector<128x128xf32>
    %cst = arith.constant dense<0.000000e+00> : vector<16x128xf32>
    %5 = tpu.matmul %3, %4, %cst {dimension_numbers = #tpu.dot_dimension_numbers<[1], [0], [0], [1], [0, 0, 1, 1], [], []>} : vector<16x128xf32>, vector<128x128xf32>, vector<16x128xf32> -> vector<16x128xf32>
    %c0_4 = arith.constant 0 : index
    %c0_5 = arith.constant 0 : index
    %6 = vector.load %arg4[%c0_4, %c0_5] : memref<1x128xf32, #tpu.memory_space<vmem>>, vector<1x128xf32>
    %7 = vector.broadcast %6 : vector<1x128xf32> to vector<16x128xf32>
    %8 = arith.addf %5, %7 : vector<16x128xf32>
    %cst_6 = arith.constant 5.000000e-01 : f32
    %9 = vector.broadcast %cst_6 : f32 to vector<16x128xf32>
    %10 = arith.mulf %9, %8 : vector<16x128xf32>
    %11 = arith.mulf %8, %8 : vector<16x128xf32>
    %12 = arith.mulf %11, %8 : vector<16x128xf32>
    %cst_7 = arith.constant 4.471500e-02 : f32
    %13 = vector.broadcast %cst_7 : f32 to vector<16x128xf32>
    %14 = arith.mulf %13, %12 : vector<16x128xf32>
    %15 = arith.addf %8, %14 : vector<16x128xf32>
    %cst_8 = arith.constant 0.797884583 : f32
    %16 = vector.broadcast %cst_8 : f32 to vector<16x128xf32>
    %17 = arith.mulf %16, %15 : vector<16x128xf32>
    %18 = math.tanh %17 : vector<16x128xf32>
    %cst_9 = arith.constant 1.000000e+00 : f32
    %19 = vector.broadcast %cst_9 : f32 to vector<16x128xf32>
    %20 = arith.addf %19, %18 : vector<16x128xf32>
    %21 = arith.mulf %10, %20 : vector<16x128xf32>
    %c0_10 = arith.constant 0 : index
    %c0_11 = arith.constant 0 : index
    %22 = vector.load %arg8[%c0_10, %c0_11] : memref<16x128xf32, #tpu.memory_space<vmem>>, vector<16x128xf32>
    %c0_12 = arith.constant 0 : index
    %c0_13 = arith.constant 0 : index
    %23 = vector.load %arg5[%c0_12, %c0_13] : memref<128x128xf32, #tpu.memory_space<vmem>>, vector<128x128xf32>
    %cst_14 = arith.constant dense<0.000000e+00> : vector<16x128xf32>
    %24 = tpu.matmul %21, %23, %cst_14 {dimension_numbers = #tpu.dot_dimension_numbers<[1], [0], [0], [1], [0, 0, 1, 1], [], []>} : vector<16x128xf32>, vector<128x128xf32>, vector<16x128xf32> -> vector<16x128xf32>
    %25 = arith.addf %22, %24 : vector<16x128xf32>
    %c0_15 = arith.constant 0 : index
    %c0_16 = arith.constant 0 : index
    %26 = vector.load %arg8[%c0_15, %c0_16] : memref<16x128xf32, #tpu.memory_space<vmem>>, vector<16x128xf32>
    tpu.vector_store %arg8[%c0_15, %c0_16], %25 {strides = array<i32>} : memref<16x128xf32, #tpu.memory_space<vmem>>, vector<16x128xf32>,
    %c0_i32_17 = arith.constant 0 : i32
    %27 = arith.cmpi eq, %arg1, %c0_i32_17 : i32
    %28 = arith.extui %27 : i1 to i32
    %c0_i32_18 = arith.constant 0 : i32
    %29 = arith.cmpi ne, %28, %c0_i32_18 : i32
    scf.if %29 {
      %c0_19 = arith.constant 0 : index
      %c0_20 = arith.constant 0 : index
      %30 = vector.load %arg8[%c0_19, %c0_20] : memref<16x128xf32, #tpu.memory_space<vmem>>, vector<16x128xf32>
      %c0_21 = arith.constant 0 : index
      %c0_22 = arith.constant 0 : index
      %31 = vector.load %arg6[%c0_21, %c0_22] : memref<1x128xf32, #tpu.memory_space<vmem>>, vector<1x128xf32>
      %32 = vector.broadcast %31 : vector<1x128xf32> to vector<16x128xf32>
      %33 = arith.addf %30, %32 : vector<16x128xf32>
      %c0_23 = arith.constant 0 : index
      %c0_24 = arith.constant 0 : index
      %34 = vector.load %arg7[%c0_23, %c0_24] : memref<16x128xf32, #tpu.memory_space<vmem>>, vector<16x128xf32>
      tpu.vector_store %arg7[%c0_23, %c0_24], %33 {strides = array<i32>} : memref<16x128xf32, #tpu.memory_space<vmem>>, vector<16x128xf32>,
    } else {
    }
    return
  }
  func.func @transform_0(%arg0: i32, %arg1: i32) -> (i32, i32) {
    %c0_i32 = arith.constant 0 : i32
    %c0_i32_0 = arith.constant 0 : i32
    return %arg0, %c0_i32 : i32, i32
  }
  func.func @transform_1(%arg0: i32, %arg1: i32) -> (i32, i32) {
    %c0_i32 = arith.constant 0 : i32
    %c0_i32_0 = arith.constant 0 : i32
    return %c0_i32, %arg1 : i32, i32
  }
  func.func @transform_2(%arg0: i32, %arg1: i32) -> (i32, i32) {
    %c0_i32 = arith.constant 0 : i32
    %c0_i32_0 = arith.constant 0 : i32
    return %c0_i32, %arg1 : i32, i32
  }
  func.func @transform_3(%arg0: i32, %arg1: i32) -> (i32, i32) {
    %c0_i32 = arith.constant 0 : i32
    %c0_i32_0 = arith.constant 0 : i32
    return %arg1, %c0_i32 : i32, i32
  }
  func.func @transform_4(%arg0: i32, %arg1: i32) -> (i32, i32) {
    %c0_i32 = arith.constant 0 : i32
    %c0_i32_0 = arith.constant 0 : i32
    %c0_i32_1 = arith.constant 0 : i32
    return %c0_i32, %c0_i32_0 : i32, i32
  }
  func.func @transform_5(%arg0: i32, %arg1: i32) -> (i32, i32) {
    %c0_i32 = arith.constant 0 : i32
    %c0_i32_0 = arith.constant 0 : i32
    return %arg0, %c0_i32 : i32, i32
  }
}

</mosaic_0001>

<bundles_post_ra>
// kernel: mlp_forward.1
= control target key start
LH: loop header
LB: loop body
LE: loop exit
PB: predicated region body
PF: predicated region fallthrough
CT: control target
= control target key end

     0   :  { %s517_s1 = inlined_call_operand.vmem [shape: f32[128,128], index: 1, kind: input, shape index: {}]   ;;  %s518_s0 = inlined_call_operand.vmem [shape: f32[16,128], index: 0, kind: input, shape index: {}]   ;;  %s519_s3 = inlined_call_operand.vmem [shape: f32[128,128], index: 3, kind: input, shape index: {}]   ;;  %s520_s2 = inlined_call_operand.vmem [shape: f32[1,128], index: 2, kind: input, shape index: {}]   ;;  %s521_s4 = inlined_call_operand.vmem [shape: f32[1,128], index: 4, kind: input, shape index: {}]   ;;  %s522_s5 = inlined_call_operand.vmem [shape: f32[16,128], index: 5, kind: output, shape index: {}]  }
   0x1   :  { %v43_v0 = vld [vmem:[%s517_s1 + $0x78] sm:$0xff]  ;;  %v42_v1 = vld [vmem:[%s517_s1 + $0x70] sm:$0xff]  ;;  %v41_v2 = vld [vmem:[%s517_s1 + $0x68] sm:$0xff] }
   0x2   :  { %299 = vmatprep.subr.mxu0 %v43_v0  ;;  %v40_v3 = vld [vmem:[%s517_s1 + $0x60] sm:$0xff]  ;;  %v39_v5 = vld [vmem:[%s517_s1 + $0x58] sm:$0xff]  ;;  %v38_v6 = vld [vmem:[%s517_s1 + $0x50] sm:$0xff] }
   0x3   :  { %300 = vmatpush3.msra.mxu0 %v43_v0  ;;  %v26_v4 = vld [vmem:[%s518_s0] sm:$0xff]  ;;  %v37_v7 = vld [vmem:[%s517_s1 + $0x48] sm:$0xff]  ;;  %v35_v9 = vld [vmem:[%s517_s1 + $0x38] sm:$0xff] }
   0x4   :  { %301 = vmatprep.subr.mxu0 %v42_v1  ;;  %331 = vmatprep.mubr.f32.mxu0 %v26_v4  ;;  %v36_v8 = vld [vmem:[%s517_s1 + $0x40] sm:$0xff]  ;;  %v34_v10 = vld [vmem:[%s517_s1 + $0x30] sm:$0xff]  ;;  %v33_v11 = vld [vmem:[%s517_s1 + $0x28] sm:$0xff] }
   0x5   :  { %302 = vmatpush3.msra.mxu0 %v42_v1  ;;  %v32_v12 = vld [vmem:[%s517_s1 + $0x20] sm:$0xff]  ;;  %v31_v13 = vld [vmem:[%s517_s1 + $0x18] sm:$0xff]  ;;  %v30_v14 = vld [vmem:[%s517_s1 + $0x10] sm:$0xff] }
   0x6   :  { %303 = vmatprep.subr.mxu0 %v41_v2  ;;  %v29_v15 = vld [vmem:[%s517_s1 + $0x8] sm:$0xff]  ;;  %v28_v16 = vld [vmem:[%s517_s1] sm:$0xff]  ;;  %v161_v18 = vld [vmem:[%s519_s3 + $0x78] sm:$0xff] }
   0x7   :  { %304 = vmatpush3.msra.mxu0 %v41_v2  ;;  %v27_v17 = vld [vmem:[%s518_s0 + $0x8] sm:$0xff]  ;;  %334 = vmatprep.subr.mxu1 %v161_v18  ;;  %v160_v19 = vld [vmem:[%s519_s3 + $0x70] sm:$0xff]  ;;  %v158_v21 = vld [vmem:[%s519_s3 + $0x60] sm:$0xff] }
   0x8   :  { %305 = vmatprep.subr.mxu0 %v40_v3  ;;  %335 = vmatpush3.msra.mxu1 %v161_v18  ;;  %v159_v20 = vld [vmem:[%s519_s3 + $0x68] sm:$0xff]  ;;  %v157_v22 = vld [vmem:[%s519_s3 + $0x58] sm:$0xff]  ;;  %v156_v23 = vld [vmem:[%s519_s3 + $0x50] sm:$0xff] }
   0x9   :  { %306 = vmatpush3.msra.mxu0 %v40_v3  ;;  %336 = vmatprep.subr.mxu1 %v160_v19  ;;  %v155_v24 = vld [vmem:[%s519_s3 + $0x48] sm:$0xff]  ;;  %v154_v25 = vld [vmem:[%s519_s3 + $0x40] sm:$0xff]  ;;  %v153_v26 = vld [vmem:[%s519_s3 + $0x38] sm:$0xff] }
   0xa   :  { %307 = vmatprep.subr.mxu0 %v39_v5  ;;  %337 = vmatpush3.msra.mxu1 %v160_v19  ;;  %v152_v27 = vld [vmem:[%s519_s3 + $0x30] sm:$0xff]  ;;  %v151_v28 = vld [vmem:[%s519_s3 + $0x28] sm:$0xff]  ;;  %v150_v29 = vld [vmem:[%s519_s3 + $0x20] sm:$0xff] }
   0xb   :  { %308 = vmatpush3.msra.mxu0 %v39_v5  ;;  %338 = vmatprep.subr.mxu1 %v159_v20  ;;  %v149_v30 = vld [vmem:[%s519_s3 + $0x18] sm:$0xff]  ;;  %v148_v31 = vld [vmem:[%s519_s3 + $0x10] sm:$0xff]  ;;  %v147_v32 = vld [vmem:[%s519_s3 + $0x8] sm:$0xff] }
   0xc   :  { %309 = vmatprep.subr.mxu0 %v38_v6  ;;  %339 = vmatpush3.msra.mxu1 %v159_v20  ;;  %v146_v33 = vld [vmem:[%s519_s3] sm:$0xff] }
   0xd   :  { %310 = vmatpush3.msra.mxu0 %v38_v6  ;;  %340 = vmatprep.subr.mxu1 %v158_v21  ;;  %v261_v34 = vld [vmem:[%s520_s2] ss:$0 sm:$0xff] }
   0xe   :  { %311 = vmatprep.subr.mxu0 %v37_v7  ;;  %341 = vmatpush3.msra.mxu1 %v158_v21  ;;  %v262_v57 = vld [vmem:[%s521_s4] ss:$0 sm:$0xff] }
   0xf   :  { %312 = vmatpush3.msra.mxu0 %v37_v7  ;;  %342 = vmatprep.subr.mxu1 %v157_v22 }
  0x10   :  { %313 = vmatprep.subr.mxu0 %v36_v8  ;;  %343 = vmatpush3.msra.mxu1 %v157_v22 }
  0x11   :  { %314 = vmatpush3.msra.mxu0 %v36_v8  ;;  %344 = vmatprep.subr.mxu1 %v156_v23 }
  0x12   :  { %315 = vmatprep.subr.mxu0 %v35_v9  ;;  %345 = vmatpush3.msra.mxu1 %v156_v23 }
  0x13   :  { %316 = vmatpush3.msra.mxu0 %v35_v9  ;;  %346 = vmatprep.subr.mxu1 %v155_v24 }
  0x14   :  { %317 = vmatprep.subr.mxu0 %v34_v10  ;;  %347 = vmatpush3.msra.mxu1 %v155_v24 }
  0x15   :  { %318 = vmatpush3.msra.mxu0 %v34_v10  ;;  %348 = vmatprep.subr.mxu1 %v154_v25 }
  0x16   :  { %319 = vmatprep.subr.mxu0 %v33_v11  ;;  %349 = vmatpush3.msra.mxu1 %v154_v25 }
  0x17   :  { %320 = vmatpush3.msra.mxu0 %v33_v11  ;;  %350 = vmatprep.subr.mxu1 %v153_v26 }
  0x18   :  { %321 = vmatprep.subr.mxu0 %v32_v12  ;;  %351 = vmatpush3.msra.mxu1 %v153_v26 }
  0x19   :  { %322 = vmatpush3.msra.mxu0 %v32_v12  ;;  %352 = vmatprep.subr.mxu1 %v152_v27 }
  0x1a   :  { %323 = vmatprep.subr.mxu0 %v31_v13  ;;  %353 = vmatpush3.msra.mxu1 %v152_v27 }
  0x1b   :  { %324 = vmatpush3.msra.mxu0 %v31_v13  ;;  %354 = vmatprep.subr.mxu1 %v151_v28 }
  0x1c   :  { %325 = vmatprep.subr.mxu0 %v30_v14  ;;  %355 = vmatpush3.msra.mxu1 %v151_v28 }
  0x1d   :  { %326 = vmatpush3.msra.mxu0 %v30_v14  ;;  %356 = vmatprep.subr.mxu1 %v150_v29 }
  0x1e   :  { %327 = vmatprep.subr.mxu0 %v29_v15  ;;  %357 = vmatpush3.msra.mxu1 %v150_v29 }
  0x1f   :  { %328 = vmatpush3.msra.mxu0 %v29_v15  ;;  %358 = vmatprep.subr.mxu1 %v149_v30 }
  0x20   :  { %329 = vmatprep.subr.mxu0 %v28_v16  ;;  %359 = vmatpush3.msra.mxu1 %v149_v30 }
  0x21   :  { %330 = vmatpush3.msra.mxu0 %v28_v16  ;;  %360 = vmatprep.subr.mxu1 %v148_v31 }
  0x22   :  { %332 = vmatmul.mubr.f32.vlgmr.msra.gmra.mxu0 %v27_v17  ;;  %361 = vmatpush3.msra.mxu1 %v148_v31 }
  0x23   :  { %362 = vmatprep.subr.mxu1 %v147_v32 }
  0x24   :  { %363 = vmatpush3.msra.mxu1 %v147_v32 }
  0x25   :  { %364 = vmatprep.subr.mxu1 %v146_v33 }
  0x26   :  { %365 = vmatpush3.msra.mxu1 %v146_v33 }
  0xe2   :  { %v333_v35 = vpop.f32.mrf.mxu0 }
  0xe3   :  { %v123_v36 = vadd.f32 %v333_v35, %v261_v34 }
  0xe4   :  { %v117_v37 = vpop.f32.mrf.mxu0 }
  0xe5   :  { %v129_v38 = vmul.f32 %v123_v36, %v123_v36  ;;  %v118_v39 = vadd.f32 %v261_v34, %v117_v37  ;;  %v127_v54 = vmul.f32 0.5, %v123_v36 }
  0xe7   :  { %v131_v40 = vmul.f32 %v129_v38, %v123_v36  ;;  %v128_v41 = vmul.f32 %v118_v39, %v118_v39  ;;  %v126_v52 = vmul.f32 0.5, %v118_v39 }
  0xe9   :  { %v133_v42 = vmul.f32 0.044715, %v131_v40  ;;  %v130_v43 = vmul.f32 %v128_v41, %v118_v39 }
  0xeb   :  { %v135_v44 = vadd.f32 %v133_v42, %v123_v36  ;;  %v132_v45 = vmul.f32 0.044715, %v130_v43 }
  0xed   :  { %v137_v46 = vmul.f32 0.7978846, %v135_v44  ;;  %v134_v47 = vadd.f32 %v132_v45, %v118_v39 }
  0xef   :  { %v136_v48 = vmul.f32 0.7978846, %v134_v47  ;;  %369 = vtanh.f32 %v137_v46 }
  0xf1   :  { %371 = vtanh.f32 %v136_v48 }
  0xfc   :  { %v370_v49 = vpop.eup %369 }
  0xfd   :  { %v141_v51 = vadd.f32 1.0, %v370_v49 }
  0xfe   :  { %v372_v50 = vpop.eup %371 }
  0xff   :  { %v140_v53 = vadd.f32 1.0, %v372_v50  ;;  %v143_v56 = vmul.f32 %v141_v51, %v127_v54 }
 0x101   :  { %v142_v55 = vmul.f32 %v140_v53, %v126_v52 }
 0x103   :  { %366 = vmatprep.mubr.f32.mxu1 %v142_v55 }
 0x104   :  { %367 = vmatmul.mubr.f32.vlgmr.msra.gmra.mxu1 %v143_v56 }
 0x1c4   :  { %v368_v58 = vpop.f32.mrf.mxu1 }
 0x1c5   :  { %v254_v59 = vadd.f32 %v368_v58, %v262_v57 }
 0x1c6   :  { %v228_v60 = vpop.f32.mrf.mxu1 }
 0x1c7   :  { %256 = vst [vmem:[%s522_s5 + $0x8] sm:$0xff] %v254_v59  ;;  %v253_v61 = vadd.f32 %v262_v57, %v228_v60 }
 0x1c9   :  { %255 = vst [vmem:[%s522_s5] sm:$0xff] %v253_v61 }

</bundles_post_ra>
